<compile_context>
chip_gen: v7x
topology: tpu7x:2x2x1
jax: 0.10.0
libtpu: 0.0.40
codegen_flags: <defaults>
</compile_context>

<pallas_src>
import math

import jax
import jax.numpy as jnp
from jax.experimental import pallas as pl
from jax.experimental.pallas import tpu as pltpu


# ---------------------------------------------------------------------------
# Kernel
# ---------------------------------------------------------------------------
def _make_kernel(seg_h: int, seg_w: int, sel_dtype):
    """seg_h/seg_w: per-image H and (un-folded) W; sel_dtype: dtype of the selection path."""

    def kernel(f_ref, v_ref, r_ref, out_ref):
        f = f_ref[...].astype(jnp.float32)
        v = v_ref[...].astype(jnp.float32)
        r = r_ref[...].astype(jnp.float32)
        tr, wf = f.shape
        shape = (tr, wf)

        # Replicate-padding edge masks built in-kernel (no HBM index inputs).
        # Block height is tn*seg_h and the slab width is fw*seg_w, so local indices mod
        # the static image extents give per-image coordinates (h/w static; pow2 -> AND).
        row_idx = jax.lax.broadcasted_iota(jnp.int32, (tr, 1), 0)
        if tr > seg_h:
            row_idx = row_idx % seg_h
        col_idx = jax.lax.broadcasted_iota(jnp.int32, (1, wf), 1)
        if wf > seg_w:
            col_idx = col_idx % seg_w
        top = jnp.broadcast_to(row_idx == 0, shape)
        bot = jnp.broadcast_to(row_idx == seg_h - 1, shape)
        left = jnp.broadcast_to(col_idx == 0, shape)
        right = jnp.broadcast_to(col_idx == seg_w - 1, shape)

        def shifts(x, axis, lo_mask, hi_mask):
            # xm[i] = x[clamp(i-1)], xp[i] = x[clamp(i+1)]  (replicate at image edges)
            n = x.shape[axis]
            xm = jnp.where(lo_mask, x, pltpu.roll(x, 1, axis))
            xp = jnp.where(hi_mask, x, pltpu.roll(x, n - 1, axis))
            return xm, xp

        def sobel(x):
            # Unnormalized separable Sobel; the 1/8 scale is hoisted into the wrapper
            # denominator (loss path) or cancels in the comparison (selection path).
            xm, xp = shifts(x, 1, left, right)
            dw = xp - xm                      # [-1,0,1] along W
            sw = xm + 2.0 * x + xp            # [ 1,2,1] along W
            dm, dp = shifts(dw, 0, top, bot)
            gx = dm + 2.0 * dw + dp
            sm, sp = shifts(sw, 0, top, bot)
            gy = sp - sm
            return gx, gy

        def low_pass(x):
            # Unnormalized [1,2,1]x[1,2,1]; 1/16 cancels inside the |.| comparison.
            xm, xp = shifts(x, 1, left, right)
            sw = xm + 2.0 * x + xp
            sm, sp = shifts(sw, 0, top, bot)
            return sm + 2.0 * sw + sp

        # ----- selection path (optionally bf16 on v6e/v7x) -------------------
        if sel_dtype == jnp.float32:
            vs, rs = v, r
        else:
            vs = v_ref[...].astype(sel_dtype)
            rs = r_ref[...].astype(sel_dtype)
        gx_lv, gy_lv = sobel(low_pass(vs))
        gx_lr, gy_lr = sobel(low_pass(rs))
        use_vis_x = jnp.abs(gx_lv) > jnp.abs(gx_lr)   # == sign(a - min(a,b)) for a,b >= 0
        use_vis_y = jnp.abs(gy_lv) > jnp.abs(gy_lr)

        # ----- loss path (f32): grad(f)-grad(v) == grad(f-v); select-then-square
        gx_fv, gy_fv = sobel(f - v)
        gx_fi, gy_fi = sobel(f - r)
        dx = jnp.where(use_vis_x, gx_fv, gx_fi)
        dy = jnp.where(use_vis_y, gy_fv, gy_fi)
        contrib = dx * dx + dy * dy

        # ----- per-block partial: lane/sublane-dense, VALU-only reduction ----
        if (tr % 8 == 0) and (wf % 128 == 0):
            # Sum row-groups of 8 (whole-vreg adds), then fold lane groups of 128.
            part = jnp.sum(contrib.reshape(tr // 8, 8, wf), axis=0)      # (8, wf)
            acc = part[:, 0:128]
            for j in range(1, wf // 128):
                acc = acc + part[:, 128 * j:128 * (j + 1)]
            out_ref[0] = acc
        else:
            # Rare fallback for ragged blocks: scalar reduce + scatter to [0,0,0].
            s = jnp.sum(contrib)
            srow = jax.lax.broadcasted_iota(jnp.int32, (1, 8, 128), 1)
            scol = jax.lax.broadcasted_iota(jnp.int32, (1, 8, 128), 2)
            out_ref[...] = jnp.where((srow == 0) & (scol == 0), s, jnp.float32(0.0))

    return kernel


# ---------------------------------------------------------------------------
# Generation-aware tuning + planning
# ---------------------------------------------------------------------------
def _device_tuning():
    kind = ""
    try:
        kind = jax.devices()[0].device_kind.lower()
    except Exception:
        pass
    if "v6" in kind or "trillium" in kind:          # v6e: 128 MiB VMEM, bf16 VPU
        return dict(block_bytes=2 << 20, vmem_bytes=80 << 20, min_blocks=1, bf16_ok=True)
    if "7" in kind:                                  # v7x: 64 MiB VMEM, 2 TCs, bf16 VPU
        return dict(block_bytes=1 << 20, vmem_bytes=48 << 20, min_blocks=2, bf16_ok=True)
    if "v5" in kind:                                 # v5e/v5p: 128 MiB VMEM, no bf16 VPU
        return dict(block_bytes=2 << 20, vmem_bytes=64 << 20, min_blocks=1, bf16_ok=False)
    # Unknown / older: conservative.
    return dict(block_bytes=1 << 20, vmem_bytes=48 << 20, min_blocks=2, bf16_ok=False)


def _plan(n_imgs: int, h: int, w: int, itemsize: int, tuning: dict):
    """Pick lane-fold factor and block size (static, from shapes/dtype/device only)."""
    # Fold factor so wf = fw*w is a multiple of 128 (fully lane-dense vregs).
    if w % 128 == 0:
        fw = 1
    else:
        fw = math.lcm(w, 128) // w
        too_much_pad = fw > n_imgs
        too_big = h * fw * w * itemsize > 4 * tuning["block_bytes"]
        if too_much_pad or too_big:
            fw = max(1, min(n_imgs, 128 // w)) if w < 128 else 1
    n_img_pad = (-n_imgs) % fw
    n2 = (n_imgs + n_img_pad) // fw               # folded "image rows"
    wf = fw * w

    # Block sublane count must match the packed-dtype tile (16 for bf16, 32 for 8-bit).
    sub_mult = 16 if itemsize == 2 else (32 if itemsize == 1 else 8)

    tn = max(1, tuning["block_bytes"] // (h * wf * itemsize))
    if tuning["min_blocks"] >= 2 and n2 >= 2:
        tn = min(tn, -(-n2 // 2))                 # >= 2 grid blocks for v7x's 2 TCs
    if tn >= n2:
        tn = n2                                   # single (or exact) block: full-dim block
    else:
        while tn < n2 and (tn * h) % sub_mult != 0:
            tn += 1
        tn = min(tn, n2)
    n2_pad = (-n2) % tn
    num_blocks = (n2 + n2_pad) // tn
    return fw, n_img_pad, n2, wf, tn, n2_pad, num_blocks


def _prep(x, b, c, h, w, fw, n_img_pad, n2, wf, n2_pad):
    """(B,C,H,W) -> 2-D lane-dense slab ((n2+n2_pad)*H, fw*W), zero-padded (pads add 0 loss)."""
    n = b * c
    x = x.reshape(n, h, w)
    if n_img_pad:
        x = jnp.concatenate([x, jnp.zeros((n_img_pad, h, w), x.dtype)], axis=0)
    if fw > 1:
        # TODO(synk): this lane-fold transpose is one extra HBM pass over the inputs; if
        # this loss is called repeatedly, fuse it into the upstream producer / cache it.
        x = x.reshape(n2, fw, h, w).transpose(0, 2, 1, 3).reshape(n2, h, wf)
    else:
        x = x.reshape(n2, h, wf)
    if n2_pad:
        x = jnp.concatenate([x, jnp.zeros((n2_pad, h, wf), x.dtype)], axis=0)
    return x.reshape((n2 + n2_pad) * h, wf)


# ---------------------------------------------------------------------------
# Wrapper
# ---------------------------------------------------------------------------
@jax.jit
def adaptive_gradient_l2_loss(fused_img, vis, ir):
    assert fused_img.shape == vis.shape == ir.shape and fused_img.ndim == 4
    b, c, h, w = fused_img.shape
    dtype = fused_img.dtype
    itemsize = dtype.itemsize
    tuning = _device_tuning()
    fw, n_img_pad, n2, wf, tn, n2_pad, num_blocks = _plan(b * c, h, w, itemsize, tuning)

    prep = lambda x: _prep(x, b, c, h, w, fw, n_img_pad, n2, wf, n2_pad)
    f2, v2, r2 = prep(fused_img), prep(vis), prep(ir)

    tr = tn * h
    # bf16 selection path only on chips with a bf16 VPU, and only when the caller already
    # supplies bf16 (keeps f32 callers bit-stable; loss path is always f32).
    sel_dtype = jnp.bfloat16 if (tuning["bf16_ok"] and dtype == jnp.bfloat16) else jnp.float32

    img_spec = pl.BlockSpec((tr, wf), lambda n: (n, 0))
    partials = pl.pallas_call(
        _make_kernel(h, w, sel_dtype),
        out_shape=jax.ShapeDtypeStruct((num_blocks, 8, 128), jnp.float32),
        grid=(num_blocks,),
        in_specs=[img_spec, img_spec, img_spec],            # fused, vis, ir
        out_specs=pl.BlockSpec((1, 8, 128), lambda n: (n, 0, 0)),
        compiler_params=pltpu.CompilerParams(
            dimension_semantics=("parallel",),
            vmem_limit_bytes=tuning["vmem_bytes"],
        ),
    )(f2, v2, r2)

    # Both torch.mean terms share denominator B*C*2*H*W (2 = dx,dy channels); the hoisted
    # Sobel 1/8 scale appears squared -> extra factor 64.
    denom = jnp.float32(b * c * 2 * h * w) * jnp.float32(64.0)
    return jnp.sum(partials) / denom


# ---------------------------------------------------------------------------
# Pure-JAX reference (direct 3x3 convolutions, mirrors the torch code 1:1)
# ---------------------------------------------------------------------------
def _conv3x3_replicate(x, k):
    n, h, w = x.shape
    xp = jnp.pad(x, ((0, 0), (1, 1), (1, 1)), mode="edge")
    out = jnp.zeros_like(x)
    for a in range(3):
        for bcol in range(3):
            out = out + k[a][bcol] * xp[:, a:a + h, bcol:bcol + w]
    return out


def _reference_loss(fused, vis, ir):
    b, c, h, w = fused.shape
    flat = lambda x: x.reshape(b * c, h, w).astype(jnp.float32)
    f, v, r = flat(fused), flat(vis), flat(ir)

    kx = [[-1/8, 0.0, 1/8], [-2/8, 0.0, 2/8], [-1/8, 0.0, 1/8]]
    ky = [[-1/8, -2/8, -1/8], [0.0, 0.0, 0.0], [1/8, 2/8, 1/8]]
    kg = [[1/16, 2/16, 1/16], [2/16, 4/16, 2/16], [1/16, 2/16, 1/16]]

    grad = lambda x: jnp.stack(
        [_conv3x3_replicate(x, kx), _conv3x3_replicate(x, ky)], axis=1)
    low_pass = lambda x: _conv3x3_replicate(x, kg)

    vis_glp = jnp.abs(grad(low_pass(v)))
    ir_glp = jnp.abs(grad(low_pass(r)))
    vis_score = jnp.sign(vis_glp - jnp.minimum(vis_glp, ir_glp))
    ir_score = 1.0 - vis_score

    fg, vg, rg = grad(f), grad(v), grad(r)
    return (jnp.mean(vis_score * (fg - vg) ** 2)
            + jnp.mean(ir_score * (fg - rg) ** 2))


if __name__ == "__main__":
    key = jax.random.PRNGKey(0)
    k1, k2, k3 = jax.random.split(key, 3)
    shape = (2, 4, 16, 16)
    fused = jax.random.normal(k1, shape, dtype=jnp.float32)
    vis = jax.random.normal(k2, shape, dtype=jnp.float32)
    ir = jax.random.normal(k3, shape, dtype=jnp.float32)

    loss = jax.block_until_ready(adaptive_gradient_l2_loss(fused, vis, ir))
    ref = jax.block_until_ready(_reference_loss(fused, vis, ir))
    # Tolerance covers fp reordering (separable/linearity vs direct 3x3) only; the hoisted
    # scales are powers of two, so they introduce no additional rounding.
    assert jnp.allclose(loss, ref, rtol=1e-3, atol=1e-6), (loss, ref)

    print("KERNEL_OK")
</pallas_src>

<mosaic_0001>
module attributes {stable_mosaic.version = 11 : i64} {
  func.func @kernel(%arg0: i32, %arg1: memref<16x128xf32, #tpu.memory_space<vmem>>, %arg2: memref<16x128xf32, #tpu.memory_space<vmem>>, %arg3: memref<16x128xf32, #tpu.memory_space<vmem>>, %arg4: memref<1x8x128xf32, #tpu.memory_space<vmem>>) attributes {dimension_semantics = [#tpu.dimension_semantics<parallel>], iteration_bounds = array<i64: 1>, scalar_prefetch = 0 : i64, scratch_operands = 0 : i64, tpu.core_type = #tpu.core_type<tc>, window_params = [{transform_indices = @transform_0, window_bounds = array<i64: 16, 128>}, {transform_indices = @transform_1, window_bounds = array<i64: 16, 128>}, {transform_indices = @transform_2, window_bounds = array<i64: 16, 128>}, {transform_indices = @transform_3, window_bounds = array<i64: 1, 8, 128>}]} {
    %c0 = arith.constant 0 : index
    %c0_0 = arith.constant 0 : index
    %0 = vector.load %arg1[%c0, %c0_0] : memref<16x128xf32, #tpu.memory_space<vmem>>, vector<16x128xf32>
    %c0_1 = arith.constant 0 : index
    %c0_2 = arith.constant 0 : index
    %1 = vector.load %arg2[%c0_1, %c0_2] : memref<16x128xf32, #tpu.memory_space<vmem>>, vector<16x128xf32>
    %c0_3 = arith.constant 0 : index
    %c0_4 = arith.constant 0 : index
    %2 = vector.load %arg3[%c0_3, %c0_4] : memref<16x128xf32, #tpu.memory_space<vmem>>, vector<16x128xf32>
    %3 = tpu.iota {dimensions = array<i32: 0>} : vector<16x1xi32>
    %4 = tpu.iota {dimensions = array<i32: 1>} : vector<1x128xi32>
    %c16_i32 = arith.constant 16 : i32
    %c0_i32 = arith.constant 0 : i32
    %5 = arith.cmpi eq, %c16_i32, %c0_i32 : i32
    %c1_i32 = arith.constant 1 : i32
    %6 = arith.select %5, %c1_i32, %c16_i32 : i32
    %7 = vector.broadcast %6 : i32 to vector<1x128xi32>
    %8 = arith.remsi %4, %7 : vector<1x128xi32>
    %c0_i32_5 = arith.constant 0 : i32
    %9 = vector.broadcast %c0_i32_5 : i32 to vector<1x128xi32>
    %10 = arith.cmpi ne, %8, %9 : vector<1x128xi32>
    %c0_i32_6 = arith.constant 0 : i32
    %11 = vector.broadcast %c0_i32_6 : i32 to vector<1x128xi32>
    %12 = arith.cmpi slt, %8, %11 : vector<1x128xi32>
    %c0_i32_7 = arith.constant 0 : i32
    %13 = arith.cmpi slt, %6, %c0_i32_7 : i32
    %14 = vector.broadcast %13 : i1 to vector<1x128xi1>
    %15 = vector.broadcast %14 : vector<1x128xi1> to vector<1x128xi1>
    %16 = arith.xori %12, %15 : vector<1x128xi1>
    %17 = arith.andi %16, %10 : vector<1x128xi1>
    %18 = vector.broadcast %6 : i32 to vector<1x128xi32>
    %19 = arith.addi %8, %18 : vector<1x128xi32>
    %20 = arith.select %17, %19, %8 : vector<1x128xi1>, vector<1x128xi32>
    %c0_i32_8 = arith.constant 0 : i32
    %21 = vector.broadcast %c0_i32_8 : i32 to vector<16x1xi32>
    %22 = arith.cmpi eq, %3, %21 : vector<16x1xi32>
    %23 = vector.shape_cast %22 : vector<16x1xi1> to vector<16x1xi1>
    %24 = vector.broadcast %23 : vector<16x1xi1> to vector<16x128xi1>
    %c15_i32 = arith.constant 15 : i32
    %25 = vector.broadcast %c15_i32 : i32 to vector<16x1xi32>
    %26 = arith.cmpi eq, %3, %25 : vector<16x1xi32>
    %27 = vector.shape_cast %26 : vector<16x1xi1> to vector<16x1xi1>
    %28 = vector.broadcast %27 : vector<16x1xi1> to vector<16x128xi1>
    %c0_i32_9 = arith.constant 0 : i32
    %29 = vector.broadcast %c0_i32_9 : i32 to vector<1x128xi32>
    %30 = arith.cmpi eq, %20, %29 : vector<1x128xi32>
    %31 = vector.shape_cast %30 : vector<1x128xi1> to vector<1x128xi1>
    %32 = vector.broadcast %31 : vector<1x128xi1> to vector<16x128xi1>
    %c15_i32_10 = arith.constant 15 : i32
    %33 = vector.broadcast %c15_i32_10 : i32 to vector<1x128xi32>
    %34 = arith.cmpi eq, %20, %33 : vector<1x128xi32>
    %35 = vector.shape_cast %34 : vector<1x128xi1> to vector<1x128xi1>
    %36 = vector.broadcast %35 : vector<1x128xi1> to vector<16x128xi1>
    %c1_i32_11 = arith.constant 1 : i32
    %37 = tpu.dynamic_rotate %1 by %c1_i32_11 dim 1 : vector<16x128xf32>, i32 -> vector<16x128xf32>
    %38 = arith.select %32, %1, %37 : vector<16x128xi1>, vector<16x128xf32>
    %c127_i32 = arith.constant 127 : i32
    %39 = tpu.dynamic_rotate %1 by %c127_i32 dim 1 : vector<16x128xf32>, i32 -> vector<16x128xf32>
    %40 = arith.select %36, %1, %39 : vector<16x128xi1>, vector<16x128xf32>
    %cst = arith.constant 2.000000e+00 : f32
    %41 = vector.broadcast %cst : f32 to vector<16x128xf32>
    %42 = arith.mulf %41, %1 : vector<16x128xf32>
    %43 = arith.addf %38, %42 : vector<16x128xf32>
    %44 = arith.addf %43, %40 : vector<16x128xf32>
    %c1_i32_12 = arith.constant 1 : i32
    %45 = tpu.dynamic_rotate %44 by %c1_i32_12 dim 0 : vector<16x128xf32>, i32 -> vector<16x128xf32>
    %46 = arith.select %24, %44, %45 : vector<16x128xi1>, vector<16x128xf32>
    %c15_i32_13 = arith.constant 15 : i32
    %47 = tpu.dynamic_rotate %44 by %c15_i32_13 dim 0 : vector<16x128xf32>, i32 -> vector<16x128xf32>
    %48 = arith.select %28, %44, %47 : vector<16x128xi1>, vector<16x128xf32>
    %cst_14 = arith.constant 2.000000e+00 : f32
    %49 = vector.broadcast %cst_14 : f32 to vector<16x128xf32>
    %50 = arith.mulf %49, %44 : vector<16x128xf32>
    %51 = arith.addf %46, %50 : vector<16x128xf32>
    %52 = arith.addf %51, %48 : vector<16x128xf32>
    %c1_i32_15 = arith.constant 1 : i32
    %53 = tpu.dynamic_rotate %52 by %c1_i32_15 dim 1 : vector<16x128xf32>, i32 -> vector<16x128xf32>
    %54 = arith.select %32, %52, %53 : vector<16x128xi1>, vector<16x128xf32>
    %c127_i32_16 = arith.constant 127 : i32
    %55 = tpu.dynamic_rotate %52 by %c127_i32_16 dim 1 : vector<16x128xf32>, i32 -> vector<16x128xf32>
    %56 = arith.select %36, %52, %55 : vector<16x128xi1>, vector<16x128xf32>
    %57 = arith.subf %56, %54 : vector<16x128xf32>
    %cst_17 = arith.constant 2.000000e+00 : f32
    %58 = vector.broadcast %cst_17 : f32 to vector<16x128xf32>
    %59 = arith.mulf %58, %52 : vector<16x128xf32>
    %60 = arith.addf %54, %59 : vector<16x128xf32>
    %61 = arith.addf %60, %56 : vector<16x128xf32>
    %c1_i32_18 = arith.constant 1 : i32
    %62 = tpu.dynamic_rotate %57 by %c1_i32_18 dim 0 : vector<16x128xf32>, i32 -> vector<16x128xf32>
    %63 = arith.select %24, %57, %62 : vector<16x128xi1>, vector<16x128xf32>
    %c15_i32_19 = arith.constant 15 : i32
    %64 = tpu.dynamic_rotate %57 by %c15_i32_19 dim 0 : vector<16x128xf32>, i32 -> vector<16x128xf32>
    %65 = arith.select %28, %57, %64 : vector<16x128xi1>, vector<16x128xf32>
    %cst_20 = arith.constant 2.000000e+00 : f32
    %66 = vector.broadcast %cst_20 : f32 to vector<16x128xf32>
    %67 = arith.mulf %66, %57 : vector<16x128xf32>
    %68 = arith.addf %63, %67 : vector<16x128xf32>
    %69 = arith.addf %68, %65 : vector<16x128xf32>
    %c1_i32_21 = arith.constant 1 : i32
    %70 = tpu.dynamic_rotate %61 by %c1_i32_21 dim 0 : vector<16x128xf32>, i32 -> vector<16x128xf32>
    %71 = arith.select %24, %61, %70 : vector<16x128xi1>, vector<16x128xf32>
    %c15_i32_22 = arith.constant 15 : i32
    %72 = tpu.dynamic_rotate %61 by %c15_i32_22 dim 0 : vector<16x128xf32>, i32 -> vector<16x128xf32>
    %73 = arith.select %28, %61, %72 : vector<16x128xi1>, vector<16x128xf32>
    %74 = arith.subf %73, %71 : vector<16x128xf32>
    %c1_i32_23 = arith.constant 1 : i32
    %75 = tpu.dynamic_rotate %2 by %c1_i32_23 dim 1 : vector<16x128xf32>, i32 -> vector<16x128xf32>
    %76 = arith.select %32, %2, %75 : vector<16x128xi1>, vector<16x128xf32>
    %c127_i32_24 = arith.constant 127 : i32
    %77 = tpu.dynamic_rotate %2 by %c127_i32_24 dim 1 : vector<16x128xf32>, i32 -> vector<16x128xf32>
    %78 = arith.select %36, %2, %77 : vector<16x128xi1>, vector<16x128xf32>
    %cst_25 = arith.constant 2.000000e+00 : f32
    %79 = vector.broadcast %cst_25 : f32 to vector<16x128xf32>
    %80 = arith.mulf %79, %2 : vector<16x128xf32>
    %81 = arith.addf %76, %80 : vector<16x128xf32>
    %82 = arith.addf %81, %78 : vector<16x128xf32>
    %c1_i32_26 = arith.constant 1 : i32
    %83 = tpu.dynamic_rotate %82 by %c1_i32_26 dim 0 : vector<16x128xf32>, i32 -> vector<16x128xf32>
    %84 = arith.select %24, %82, %83 : vector<16x128xi1>, vector<16x128xf32>
    %c15_i32_27 = arith.constant 15 : i32
    %85 = tpu.dynamic_rotate %82 by %c15_i32_27 dim 0 : vector<16x128xf32>, i32 -> vector<16x128xf32>
    %86 = arith.select %28, %82, %85 : vector<16x128xi1>, vector<16x128xf32>
    %cst_28 = arith.constant 2.000000e+00 : f32
    %87 = vector.broadcast %cst_28 : f32 to vector<16x128xf32>
    %88 = arith.mulf %87, %82 : vector<16x128xf32>
    %89 = arith.addf %84, %88 : vector<16x128xf32>
    %90 = arith.addf %89, %86 : vector<16x128xf32>
    %c1_i32_29 = arith.constant 1 : i32
    %91 = tpu.dynamic_rotate %90 by %c1_i32_29 dim 1 : vector<16x128xf32>, i32 -> vector<16x128xf32>
    %92 = arith.select %32, %90, %91 : vector<16x128xi1>, vector<16x128xf32>
    %c127_i32_30 = arith.constant 127 : i32
    %93 = tpu.dynamic_rotate %90 by %c127_i32_30 dim 1 : vector<16x128xf32>, i32 -> vector<16x128xf32>
    %94 = arith.select %36, %90, %93 : vector<16x128xi1>, vector<16x128xf32>
    %95 = arith.subf %94, %92 : vector<16x128xf32>
    %cst_31 = arith.constant 2.000000e+00 : f32
    %96 = vector.broadcast %cst_31 : f32 to vector<16x128xf32>
    %97 = arith.mulf %96, %90 : vector<16x128xf32>
    %98 = arith.addf %92, %97 : vector<16x128xf32>
    %99 = arith.addf %98, %94 : vector<16x128xf32>
    %c1_i32_32 = arith.constant 1 : i32
    %100 = tpu.dynamic_rotate %95 by %c1_i32_32 dim 0 : vector<16x128xf32>, i32 -> vector<16x128xf32>
    %101 = arith.select %24, %95, %100 : vector<16x128xi1>, vector<16x128xf32>
    %c15_i32_33 = arith.constant 15 : i32
    %102 = tpu.dynamic_rotate %95 by %c15_i32_33 dim 0 : vector<16x128xf32>, i32 -> vector<16x128xf32>
    %103 = arith.select %28, %95, %102 : vector<16x128xi1>, vector<16x128xf32>
    %cst_34 = arith.constant 2.000000e+00 : f32
    %104 = vector.broadcast %cst_34 : f32 to vector<16x128xf32>
    %105 = arith.mulf %104, %95 : vector<16x128xf32>
    %106 = arith.addf %101, %105 : vector<16x128xf32>
    %107 = arith.addf %106, %103 : vector<16x128xf32>
    %c1_i32_35 = arith.constant 1 : i32
    %108 = tpu.dynamic_rotate %99 by %c1_i32_35 dim 0 : vector<16x128xf32>, i32 -> vector<16x128xf32>
    %109 = arith.select %24, %99, %108 : vector<16x128xi1>, vector<16x128xf32>
    %c15_i32_36 = arith.constant 15 : i32
    %110 = tpu.dynamic_rotate %99 by %c15_i32_36 dim 0 : vector<16x128xf32>, i32 -> vector<16x128xf32>
    %111 = arith.select %28, %99, %110 : vector<16x128xi1>, vector<16x128xf32>
    %112 = arith.subf %111, %109 : vector<16x128xf32>
    %113 = math.absf %69 : vector<16x128xf32>
    %114 = math.absf %107 : vector<16x128xf32>
    %115 = arith.cmpf ogt, %113, %114 : vector<16x128xf32>
    %116 = math.absf %74 : vector<16x128xf32>
    %117 = math.absf %112 : vector<16x128xf32>
    %118 = arith.cmpf ogt, %116, %117 : vector<16x128xf32>
    %119 = arith.subf %0, %1 : vector<16x128xf32>
    %c1_i32_37 = arith.constant 1 : i32
    %120 = tpu.dynamic_rotate %119 by %c1_i32_37 dim 1 : vector<16x128xf32>, i32 -> vector<16x128xf32>
    %121 = arith.select %32, %119, %120 : vector<16x128xi1>, vector<16x128xf32>
    %c127_i32_38 = arith.constant 127 : i32
    %122 = tpu.dynamic_rotate %119 by %c127_i32_38 dim 1 : vector<16x128xf32>, i32 -> vector<16x128xf32>
    %123 = arith.select %36, %119, %122 : vector<16x128xi1>, vector<16x128xf32>
    %124 = arith.subf %123, %121 : vector<16x128xf32>
    %cst_39 = arith.constant 2.000000e+00 : f32
    %125 = vector.broadcast %cst_39 : f32 to vector<16x128xf32>
    %126 = arith.mulf %125, %119 : vector<16x128xf32>
    %127 = arith.addf %121, %126 : vector<16x128xf32>
    %128 = arith.addf %127, %123 : vector<16x128xf32>
    %c1_i32_40 = arith.constant 1 : i32
    %129 = tpu.dynamic_rotate %124 by %c1_i32_40 dim 0 : vector<16x128xf32>, i32 -> vector<16x128xf32>
    %130 = arith.select %24, %124, %129 : vector<16x128xi1>, vector<16x128xf32>
    %c15_i32_41 = arith.constant 15 : i32
    %131 = tpu.dynamic_rotate %124 by %c15_i32_41 dim 0 : vector<16x128xf32>, i32 -> vector<16x128xf32>
    %132 = arith.select %28, %124, %131 : vector<16x128xi1>, vector<16x128xf32>
    %cst_42 = arith.constant 2.000000e+00 : f32
    %133 = vector.broadcast %cst_42 : f32 to vector<16x128xf32>
    %134 = arith.mulf %133, %124 : vector<16x128xf32>
    %135 = arith.addf %130, %134 : vector<16x128xf32>
    %136 = arith.addf %135, %132 : vector<16x128xf32>
    %c1_i32_43 = arith.constant 1 : i32
    %137 = tpu.dynamic_rotate %128 by %c1_i32_43 dim 0 : vector<16x128xf32>, i32 -> vector<16x128xf32>
    %138 = arith.select %24, %128, %137 : vector<16x128xi1>, vector<16x128xf32>
    %c15_i32_44 = arith.constant 15 : i32
    %139 = tpu.dynamic_rotate %128 by %c15_i32_44 dim 0 : vector<16x128xf32>, i32 -> vector<16x128xf32>
    %140 = arith.select %28, %128, %139 : vector<16x128xi1>, vector<16x128xf32>
    %141 = arith.subf %140, %138 : vector<16x128xf32>
    %142 = arith.subf %0, %2 : vector<16x128xf32>
    %c1_i32_45 = arith.constant 1 : i32
    %143 = tpu.dynamic_rotate %142 by %c1_i32_45 dim 1 : vector<16x128xf32>, i32 -> vector<16x128xf32>
    %144 = arith.select %32, %142, %143 : vector<16x128xi1>, vector<16x128xf32>
    %c127_i32_46 = arith.constant 127 : i32
    %145 = tpu.dynamic_rotate %142 by %c127_i32_46 dim 1 : vector<16x128xf32>, i32 -> vector<16x128xf32>
    %146 = arith.select %36, %142, %145 : vector<16x128xi1>, vector<16x128xf32>
    %147 = arith.subf %146, %144 : vector<16x128xf32>
    %cst_47 = arith.constant 2.000000e+00 : f32
    %148 = vector.broadcast %cst_47 : f32 to vector<16x128xf32>
    %149 = arith.mulf %148, %142 : vector<16x128xf32>
    %150 = arith.addf %144, %149 : vector<16x128xf32>
    %151 = arith.addf %150, %146 : vector<16x128xf32>
    %c1_i32_48 = arith.constant 1 : i32
    %152 = tpu.dynamic_rotate %147 by %c1_i32_48 dim 0 : vector<16x128xf32>, i32 -> vector<16x128xf32>
    %153 = arith.select %24, %147, %152 : vector<16x128xi1>, vector<16x128xf32>
    %c15_i32_49 = arith.constant 15 : i32
    %154 = tpu.dynamic_rotate %147 by %c15_i32_49 dim 0 : vector<16x128xf32>, i32 -> vector<16x128xf32>
    %155 = arith.select %28, %147, %154 : vector<16x128xi1>, vector<16x128xf32>
    %cst_50 = arith.constant 2.000000e+00 : f32
    %156 = vector.broadcast %cst_50 : f32 to vector<16x128xf32>
    %157 = arith.mulf %156, %147 : vector<16x128xf32>
    %158 = arith.addf %153, %157 : vector<16x128xf32>
    %159 = arith.addf %158, %155 : vector<16x128xf32>
    %c1_i32_51 = arith.constant 1 : i32
    %160 = tpu.dynamic_rotate %151 by %c1_i32_51 dim 0 : vector<16x128xf32>, i32 -> vector<16x128xf32>
    %161 = arith.select %24, %151, %160 : vector<16x128xi1>, vector<16x128xf32>
    %c15_i32_52 = arith.constant 15 : i32
    %162 = tpu.dynamic_rotate %151 by %c15_i32_52 dim 0 : vector<16x128xf32>, i32 -> vector<16x128xf32>
    %163 = arith.select %28, %151, %162 : vector<16x128xi1>, vector<16x128xf32>
    %164 = arith.subf %163, %161 : vector<16x128xf32>
    %165 = arith.select %115, %136, %159 : vector<16x128xi1>, vector<16x128xf32>
    %166 = arith.select %118, %141, %164 : vector<16x128xi1>, vector<16x128xf32>
    %167 = arith.mulf %165, %165 : vector<16x128xf32>
    %168 = arith.mulf %166, %166 : vector<16x128xf32>
    %169 = arith.addf %167, %168 : vector<16x128xf32>
    %170 = vector.shape_cast %169 : vector<16x128xf32> to vector<2x8x128xf32>
    %cst_53 = arith.constant dense<0.000000e+00> : vector<8x128xf32>
    %171 = vector.multi_reduction <add>, %170, %cst_53 [0] : vector<2x8x128xf32> to vector<8x128xf32>
    %c0_54 = arith.constant 0 : index
    %c0_55 = arith.constant 0 : index
    %c0_56 = arith.constant 0 : index
    %172 = vector.load %arg4[%c0_54, %c0_55, %c0_56] : memref<1x8x128xf32, #tpu.memory_space<vmem>>, vector<1x8x128xf32>
    %173 = vector.shape_cast %172 : vector<1x8x128xf32> to vector<8x128xf32>
    %174 = vector.shape_cast %171 : vector<8x128xf32> to vector<1x8x128xf32>
    tpu.vector_store %arg4[%c0_54, %c0_55, %c0_56], %174 {strides = array<i32>} : memref<1x8x128xf32, #tpu.memory_space<vmem>>, vector<1x8x128xf32>,
    return
  }
  func.func @transform_0(%arg0: i32) -> (i32, i32) {
    %c0_i32 = arith.constant 0 : i32
    %c0_i32_0 = arith.constant 0 : i32
    return %arg0, %c0_i32 : i32, i32
  }
  func.func @transform_1(%arg0: i32) -> (i32, i32) {
    %c0_i32 = arith.constant 0 : i32
    %c0_i32_0 = arith.constant 0 : i32
    return %arg0, %c0_i32 : i32, i32
  }
  func.func @transform_2(%arg0: i32) -> (i32, i32) {
    %c0_i32 = arith.constant 0 : i32
    %c0_i32_0 = arith.constant 0 : i32
    return %arg0, %c0_i32 : i32, i32
  }
  func.func @transform_3(%arg0: i32) -> (i32, i32, i32) {
    %c0_i32 = arith.constant 0 : i32
    %c0_i32_0 = arith.constant 0 : i32
    %c0_i32_1 = arith.constant 0 : i32
    return %arg0, %c0_i32, %c0_i32_0 : i32, i32, i32
  }
}

</mosaic_0001>

<bundles_post_ra>
// kernel: adaptive_gradient_l2_loss.1
= control target key start
LH: loop header
LB: loop body
LE: loop exit
PB: predicated region body
PF: predicated region fallthrough
CT: control target
= control target key end

     0   :  { %s371_s16 = smov 1   ;;  %s372_s21 = smov 127   ;;  %v20_v10 = vlaneseq  ;;  %s751_s2 = inlined_call_operand.vmem [shape: f32[16,128], index: 2, kind: input, shape index: {}]   ;;  %s752_s1 = inlined_call_operand.vmem [shape: f32[16,128], index: 1, kind: input, shape index: {}]   ;;  %s753_s0 = inlined_call_operand.vmem [shape: f32[16,128], index: 0, kind: input, shape index: {}]   ;;  %s754_s3 = inlined_call_operand.vmem [shape: f32[1,8,128], index: 3, kind: output, shape index: {}]  }
   0x1   :  { %v396_v0 = vld [vmem:[%s751_s2] sm:$0xff]  ;;  %v407_v2 = vld [vmem:[%s751_s2 + $0x8] sm:$0xff] }
   0x2   :  { %v16_v1 = vld [vmem:[%s752_s1] sm:$0xff]  ;;  %145 = vrot.lane.b32.xlu1 %v396_v0, %s371_s16  ;;  %v17_v3 = vld [vmem:[%s752_s1 + $0x8] sm:$0xff]  ;;  %v24_v11 = vand.u32 127, %v20_v10  ;;  %v453_v16 = vshrl.u32 %v20_v10, 7  ;;  %v157_v24 = vmul.f32 2.0, %v396_v0  ;;  %v158_v25 = vmul.f32 2.0, %v407_v2 }
   0x3   :  { %55 = vrot.lane.b32.xlu0 %v16_v1, %s371_s16  ;;  %v15_v4 = vld [vmem:[%s753_s0 + $0x8] sm:$0xff]  ;;  %v14_v5 = vld [vmem:[%s753_s0] sm:$0xff]  ;;  %v67_v17 = vmul.f32 2.0, %v16_v1  ;;  %v68_v19 = vmul.f32 2.0, %v17_v3 }
   0x4   :  { %v427_v6 = vsub.f32 %v15_v4, %v17_v3  ;;  %v429_v7 = vsub.f32 %v14_v5, %v16_v1  ;;  %v440_v8 = vsub.f32 %v15_v4, %v407_v2  ;;  %v443_v9 = vsub.f32 %v14_v5, %v396_v0 }
   0x5   :  { %v29_v12 = vand.u32 15, %v24_v11  ;;  %v466_v26 = vadd.s32 8, %v453_v16  ;;  %vm37_vm2 = vcmp.eq.s32.totalorder %v453_v16, 0  ;;  %vm75_vm3 = vcmp.lt.s32.totalorder %v453_v16, 1 }
   0x6   :  { %147 = vrot.lane.b32.xlu1 %v407_v2, %s371_s16  ;;  %vm82_vm4 = vcmp.lt.s32.totalorder %v453_v16, 7 }
   0x7   :  { %57 = vrot.lane.b32.xlu0 %v17_v3, %s371_s16  ;;  %vm449_vm0 = vcmp.eq.s32.totalorder %v29_v12, 0  ;;  %vm459_vm1 = vcmp.eq.s32.totalorder %v29_v12, 15  ;;  %vm44_vm5 = vcmp.eq.s32.totalorder %v466_v26, 15 }
   0xa   :  { %63 = vrot.lane.b32.xlu1 %v17_v3, %s372_s21 }
   0xb   :  { %61 = vrot.lane.b32.xlu0 %v16_v1, %s372_s21 }
   0xe   :  { %153 = vrot.lane.b32.xlu1 %v407_v2, %s372_s21 }
   0xf   :  { %151 = vrot.lane.b32.xlu0 %v396_v0, %s372_s21 }
  0x12   :  { %249 = vrot.lane.b32.xlu1 %v427_v6, %s371_s16 }
  0x13   :  { %247 = vrot.lane.b32.xlu0 %v429_v7, %s371_s16 }
  0x16   :  { %255 = vrot.lane.b32.xlu1 %v427_v6, %s372_s21 }
  0x17   :  { %253 = vrot.lane.b32.xlu0 %v429_v7, %s372_s21 }
  0x1a   :  { %303 = vrot.lane.b32.xlu1 %v440_v8, %s371_s16 }
  0x1b   :  { %301 = vrot.lane.b32.xlu0 %v443_v9, %s371_s16 }
  0x74   :  { %v146_v13 = vpop.permute.xlu1 %145 }
  0x75   :  { %v56_v14 = vpop.permute.xlu0 %55  ;;  %v149_v27 = vsel %vm449_vm0, %v396_v0, %v146_v13 }
  0x76   :  { %v59_v21 = vsel %vm449_vm0, %v16_v1, %v56_v14  ;;  %v159_v37 = vadd.f32 %v157_v24, %v149_v27  ;;  %v262_v24 = vmul.f32 2.0, %v427_v6 }
  0x77   :  { %v69_v28 = vadd.f32 %v67_v17, %v59_v21 }
  0x78   :  { %v148_v18 = vpop.permute.xlu1 %147 }
  0x79   :  { %v58_v20 = vpop.permute.xlu0 %57  ;;  %v150_v29 = vsel %vm449_vm0, %v407_v2, %v148_v18 }
  0x7a   :  { %v60_v22 = vsel %vm449_vm0, %v17_v3, %v58_v20  ;;  %v160_v38 = vadd.f32 %v158_v25, %v150_v29  ;;  %v261_v25 = vmul.f32 2.0, %v429_v7 }
  0x7b   :  { %v70_v30 = vadd.f32 %v68_v19, %v60_v22 }
  0x7c   :  { %v64_v31 = vpop.permute.xlu1 %63 }
  0x7d   :  { %v62_v32 = vpop.permute.xlu0 %61  ;;  %v66_v33 = vsel %vm459_vm1, %v17_v3, %v64_v31 }
  0x7e   :  { %v65_v34 = vsel %vm459_vm1, %v16_v1, %v62_v32  ;;  %v72_v35 = vadd.f32 %v70_v30, %v66_v33 }
  0x7f   :  { %v71_v36 = vadd.f32 %v69_v28, %v65_v34 }
  0x80   :  { %v74_v39 = vrot.slane %v72_v35, 7  ;;  %v81_v40 = vrot.slane %v72_v35, 1  ;;  %v88_v41 = vmul.f32 2.0, %v72_v35  ;;  %v154_v43 = vpop.permute.xlu1 %153 }
  0x81   :  { %v73_v42 = vrot.slane %v71_v36, 7  ;;  %v152_v44 = vpop.permute.xlu0 %151  ;;  %v80_v45 = vrot.slane %v71_v36, 1  ;;  %v87_v46 = vmul.f32 2.0, %v71_v36  ;;  %v156_v47 = vsel %vm459_vm1, %v407_v2, %v154_v43 }
  0x82   :  { %v155_v48 = vsel %vm459_vm1, %v396_v0, %v152_v44  ;;  %v162_v50 = vadd.f32 %v160_v38, %v156_v47  ;;  %v562_v44 = vmul.f32 2.0, %v443_v9 }
  0x83   :  { %v77_v49 = vsel %vm75_vm3, %v74_v39, %v73_v42  ;;  %v161_v51 = vadd.f32 %v159_v37, %v155_v48  ;;  %v76_v52 = vsel %vm75_vm3, %v73_v42, %v74_v39  ;;  %v84_v54 = vsel %vm82_vm4, %v81_v40, %v80_v45 }
  0x84   :  { %v78_v53 = vsel %vm37_vm2, %v71_v36, %v77_v49  ;;  %v90_v55 = vadd.f32 %v88_v41, %v76_v52  ;;  %v164_v57 = vrot.slane %v162_v50, 7  ;;  %v170_v58 = vrot.slane %v162_v50, 1  ;;  %v250_v19 = vpop.permute.xlu1 %249 }
  0x85   :  { %v89_v56 = vadd.f32 %v87_v46, %v78_v53  ;;  %v163_v59 = vrot.slane %v161_v51, 7  ;;  %v169_v60 = vrot.slane %v161_v51, 1  ;;  %v86_v61 = vsel %vm44_vm5, %v72_v35, %v84_v54  ;;  %v248_v20 = vpop.permute.xlu0 %247 }
  0x86   :  { %v83_v62 = vsel %vm82_vm4, %v80_v45, %v81_v40  ;;  %v176_v63 = vmul.f32 2.0, %v162_v50  ;;  %v500_v0 = vadd.f32 %v90_v55, %v86_v61  ;;  %v175_v5 = vmul.f32 2.0, %v161_v51 }
  0x87   :  { %v502_v1 = vadd.f32 %v89_v56, %v83_v62  ;;  %v166_v2 = vsel %vm75_vm3, %v164_v57, %v163_v59  ;;  %v165_v3 = vsel %vm75_vm3, %v163_v59, %v164_v57  ;;  %v172_v10 = vsel %vm82_vm4, %v170_v58, %v169_v60 }
  0x88   :  { %v167_v4 = vsel %vm37_vm2, %v161_v51, %v166_v2  ;;  %95 = vrot.lane.b32.xlu1 %v500_v0, %s371_s16  ;;  %v178_v12 = vadd.f32 %v176_v63, %v165_v3  ;;  %v174_v13 = vsel %vm44_vm5, %v162_v50, %v172_v10  ;;  %v171_v14 = vsel %vm82_vm4, %v169_v60, %v170_v58  ;;  %v256_v21 = vpop.permute.xlu1 %255 }
  0x89   :  { %93 = vrot.lane.b32.xlu0 %v502_v1, %s371_s16  ;;  %v177_v11 = vadd.f32 %v175_v5, %v167_v4  ;;  %v254_v22 = vpop.permute.xlu0 %253  ;;  %v252_v27 = vsel %vm449_vm0, %v427_v6, %v250_v19  ;;  %v251_v28 = vsel %vm449_vm0, %v429_v7, %v248_v20  ;;  %v258_v29 = vsel %vm459_vm1, %v427_v6, %v256_v21 }
  0x8a   :  { %v524_v17 = vadd.f32 %v178_v12, %v174_v13  ;;  %v257_v30 = vsel %vm459_vm1, %v429_v7, %v254_v22  ;;  %v260_v31 = vsub.f32 %v258_v29, %v252_v27  ;;  %v264_v33 = vadd.f32 %v262_v24, %v252_v27 }
  0x8b   :  { %v526_v18 = vadd.f32 %v177_v11, %v171_v14  ;;  %v259_v32 = vsub.f32 %v257_v30, %v251_v28  ;;  %v263_v34 = vadd.f32 %v261_v25, %v251_v28  ;;  %v316_v7 = vmul.f32 2.0, %v440_v8 }
  0x8c   :  { %101 = vrot.lane.b32.xlu1 %v500_v0, %s372_s21  ;;  %v304_v35 = vpop.permute.xlu1 %303  ;;  %v268_v37 = vrot.slane %v260_v31, 7  ;;  %v556_v39 = vadd.f32 %v264_v33, %v258_v29  ;;  %v274_v41 = vrot.slane %v260_v31, 1  ;;  %v280_v43 = vmul.f32 2.0, %v260_v31 }
  0x8d   :  { %99 = vrot.lane.b32.xlu0 %v502_v1, %s372_s21  ;;  %v554_v36 = vpop.permute.xlu0 %301  ;;  %v267_v38 = vrot.slane %v259_v32, 7  ;;  %v265_v40 = vadd.f32 %v263_v34, %v257_v30  ;;  %v273_v42 = vrot.slane %v259_v32, 1  ;;  %v108_v48 = vmul.f32 2.0, %v500_v0 }
  0x8e   :  { %v286_v45 = vrot.slane %v556_v39, 7  ;;  %v279_v52 = vmul.f32 2.0, %v259_v32  ;;  %v292_v55 = vrot.slane %v556_v39, 1  ;;  %v107_v57 = vmul.f32 2.0, %v502_v1 }
  0x8f   :  { %v270_v6 = vsel %vm75_vm3, %v268_v37, %v267_v38  ;;  %v269_v46 = vsel %vm75_vm3, %v267_v38, %v268_v37  ;;  %v285_v47 = vrot.slane %v265_v40, 7  ;;  %v276_v51 = vsel %vm82_vm4, %v274_v41, %v273_v42 }
  0x90   :  { %183 = vrot.lane.b32.xlu1 %v524_v17, %s371_s16  ;;  %v271_v56 = vsel %vm37_vm2, %v259_v32, %v270_v6  ;;  %v196_v58 = vmul.f32 2.0, %v524_v17  ;;  %v275_v59 = vsel %vm82_vm4, %v273_v42, %v274_v41  ;;  %v282_v60 = vadd.f32 %v280_v43, %v269_v46 }
  0x91   :  { %181 = vrot.lane.b32.xlu0 %v526_v18, %s371_s16  ;;  %v291_v61 = vrot.slane %v265_v40, 1  ;;  %v586_v62 = vsel %vm449_vm0, %v440_v8, %v304_v35  ;;  %v278_v63 = vsel %vm44_vm5, %v260_v31, %v276_v51  ;;  %v288_v2 = vsel %vm75_vm3, %v286_v45, %v285_v47 }
  0x92   :  { %v281_v11 = vadd.f32 %v279_v52, %v271_v56  ;;  %v195_v14 = vmul.f32 2.0, %v526_v18  ;;  %v599_v24 = vadd.f32 %v282_v60, %v278_v63  ;;  %v603_v25 = vsel %vm75_vm3, %v285_v47, %v286_v45 }
  0x93   :  { %v607_v27 = vsel %vm37_vm2, %v265_v40, %v288_v2  ;;  %v616_v28 = vadd.f32 %v316_v7, %v586_v62 }
  0x94   :  { %189 = vrot.lane.b32.xlu1 %v524_v17, %s372_s21  ;;  %v618_v38 = vadd.f32 %v281_v11, %v275_v59 }
  0x95   :  { %187 = vrot.lane.b32.xlu0 %v526_v18, %s372_s21 }
  0x98   :  { %309 = vrot.lane.b32.xlu1 %v440_v8, %s372_s21 }
  0x99   :  { %307 = vrot.lane.b32.xlu0 %v443_v9, %s372_s21 }
  0xfa   :  { %v96_v49 = vpop.permute.xlu1 %95 }
  0xfb   :  { %v94_v50 = vpop.permute.xlu0 %93  ;;  %v98_v53 = vsel %vm449_vm0, %v500_v0, %v96_v49 }
  0xfc   :  { %v97_v54 = vsel %vm449_vm0, %v502_v1, %v94_v50  ;;  %v110_v3 = vadd.f32 %v108_v48, %v98_v53 }
  0xfd   :  { %v109_v4 = vadd.f32 %v107_v57, %v97_v54 }
  0xfe   :  { %v102_v5 = vpop.permute.xlu1 %101 }
  0xff   :  { %v100_v10 = vpop.permute.xlu0 %99  ;;  %v104_v12 = vsel %vm459_vm1, %v500_v0, %v102_v5  ;;  %v611_v0 = vsel %vm82_vm4, %v291_v61, %v292_v55 }
 0x100   :  { %v103_v13 = vsel %vm459_vm1, %v502_v1, %v100_v10  ;;  %v106_v19 = vsub.f32 %v104_v12, %v98_v53  ;;  %v112_v20 = vadd.f32 %v110_v3, %v104_v12  ;;  %v294_v1 = vsel %vm82_vm4, %v292_v55, %v291_v61 }
 0x101   :  { %v105_v21 = vsub.f32 %v103_v13, %v97_v54  ;;  %v111_v22 = vadd.f32 %v109_v4, %v103_v13  ;;  %v643_v56 = vsel %vm44_vm5, %v556_v39, %v294_v1  ;;  %v297_v57 = vsub.f32 %v611_v0, %v607_v27 }
 0x102   :  { %v114_v29 = vrot.slane %v106_v19, 7  ;;  %v120_v30 = vrot.slane %v106_v19, 1  ;;  %v184_v31 = vpop.permute.xlu1 %183  ;;  %v132_v33 = vrot.slane %v112_v20, 7  ;;  %v138_v34 = vrot.slane %v112_v20, 1 }
 0x103   :  { %v182_v32 = vpop.permute.xlu0 %181  ;;  %v113_v35 = vrot.slane %v105_v21, 7  ;;  %v119_v37 = vrot.slane %v105_v21, 1  ;;  %v126_v40 = vmul.f32 2.0, %v106_v19  ;;  %v131_v41 = vrot.slane %v111_v22, 7 }
 0x104   :  { %v137_v42 = vrot.slane %v111_v22, 1  ;;  %v125_v45 = vmul.f32 2.0, %v105_v21  ;;  %v186_v49 = vsel %vm449_vm0, %v524_v17, %v184_v31  ;;  %v185_v54 = vsel %vm449_vm0, %v526_v18, %v182_v32 }
 0x105   :  { %v115_v43 = vsel %vm75_vm3, %v113_v35, %v114_v29  ;;  %v116_v6 = vsel %vm75_vm3, %v114_v29, %v113_v35  ;;  %v122_v7 = vsel %vm82_vm4, %v120_v30, %v119_v37  ;;  %v134_v52 = vsel %vm75_vm3, %v132_v33, %v131_v41 }
 0x106   :  { %v117_v46 = vsel %vm37_vm2, %v105_v21, %v116_v6  ;;  %v124_v47 = vsel %vm44_vm5, %v106_v19, %v122_v7  ;;  %v128_v48 = vadd.f32 %v126_v40, %v115_v43  ;;  %v190_v50 = vpop.permute.xlu1 %189  ;;  %v140_v53 = vsel %vm82_vm4, %v138_v34, %v137_v42 }
 0x107   :  { %v127_v51 = vadd.f32 %v125_v45, %v117_v46  ;;  %v188_v55 = vpop.permute.xlu0 %187  ;;  %v135_v59 = vsel %vm37_vm2, %v111_v22, %v134_v52  ;;  %v139_v60 = vsel %vm82_vm4, %v137_v42, %v138_v34  ;;  %v121_v61 = vsel %vm82_vm4, %v119_v37, %v120_v30 }
 0x108   :  { %v653_v63 = vadd.f32 %v128_v48, %v124_v47  ;;  %v133_v2 = vsel %vm75_vm3, %v131_v41, %v132_v33  ;;  %v142_v39 = vsel %vm44_vm5, %v112_v20, %v140_v53  ;;  %v198_v3 = vadd.f32 %v196_v58, %v186_v49 }
 0x109   :  { %v197_v4 = vadd.f32 %v195_v14, %v185_v54  ;;  %v192_v5 = vsel %vm459_vm1, %v524_v17, %v190_v50  ;;  %v191_v10 = vsel %vm459_vm1, %v526_v18, %v188_v55  ;;  %v305_v12 = vsel %vm449_vm0, %v443_v9, %v554_v36 }
 0x10a   :  { %v310_v11 = vpop.permute.xlu1 %309  ;;  %v129_v13 = vadd.f32 %v127_v51, %v121_v61  ;;  %v143_v19 = vsub.f32 %v139_v60, %v135_v59  ;;  %v194_v21 = vsub.f32 %v192_v5, %v186_v49  ;;  %v200_v20 = vadd.f32 %v198_v3, %v192_v5 }
 0x10b   :  { %v193_v58 = vsub.f32 %v191_v10, %v185_v54  ;;  %v199_v14 = vadd.f32 %v197_v4, %v191_v10  ;;  %v312_v17 = vsel %vm459_vm1, %v440_v8, %v310_v11  ;;  %v144_v22 = vsub.f32 %v142_v39, %v133_v2  ;;  %v308_v52 = vpop.permute.xlu0 %307 }
 0x10c   :  { %v234_v1 = vand.u32 2147483647, %v653_v63  ;;  %v202_v18 = vrot.slane %v194_v21, 7  ;;  %v208_v29 = vrot.slane %v194_v21, 1  ;;  %v220_v30 = vrot.slane %v200_v20, 7 }
 0x10d   :  { %v226_v31 = vrot.slane %v200_v20, 1  ;;  %v201_v32 = vrot.slane %v193_v58, 7  ;;  %v207_v15 = vrot.slane %v193_v58, 1  ;;  %v214_v36 = vmul.f32 2.0, %v194_v21 }
 0x10e   :  { %v219_v33 = vrot.slane %v199_v14, 7  ;;  %v225_v34 = vrot.slane %v199_v14, 1  ;;  %v314_v35 = vsub.f32 %v312_v17, %v586_v62  ;;  %v213_v41 = vmul.f32 2.0, %v193_v58 }
 0x10f   :  { %v203_v37 = vsel %vm75_vm3, %v201_v32, %v202_v18  ;;  %v204_v8 = vsel %vm75_vm3, %v202_v18, %v201_v32  ;;  %v210_v40 = vsel %vm82_vm4, %v208_v29, %v207_v15  ;;  %v209_v48 = vsel %vm82_vm4, %v207_v15, %v208_v29 }
 0x110   :  { %v205_v42 = vsel %vm37_vm2, %v193_v58, %v204_v8  ;;  %v212_v43 = vsel %vm44_vm5, %v194_v21, %v210_v40  ;;  %v216_v6 = vadd.f32 %v214_v36, %v203_v37  ;;  %v221_v62 = vsel %vm75_vm3, %v219_v33, %v220_v30 }
 0x111   :  { %v215_v7 = vadd.f32 %v213_v41, %v205_v42  ;;  %v222_v45 = vsel %vm75_vm3, %v220_v30, %v219_v33  ;;  %v227_v46 = vsel %vm82_vm4, %v225_v34, %v226_v31  ;;  %v228_v47 = vsel %vm82_vm4, %v226_v31, %v225_v34 }
 0x112   :  { %v218_v49 = vadd.f32 %v216_v6, %v212_v43  ;;  %v223_v50 = vsel %vm37_vm2, %v199_v14, %v222_v45  ;;  %v230_v51 = vsel %vm44_vm5, %v200_v20, %v228_v47  ;;  %v320_v59 = vadd.f32 %v616_v28, %v312_v17 }
 0x113   :  { %v217_v53 = vadd.f32 %v215_v7, %v209_v48  ;;  %v231_v54 = vsub.f32 %v227_v46, %v223_v50  ;;  %v232_v55 = vsub.f32 %v230_v51, %v221_v62  ;;  %v317_v60 = vadd.f32 %v562_v44, %v305_v12 }
 0x114   :  { %v233_v61 = vand.u32 2147483647, %v129_v13  ;;  %v239_v63 = vand.u32 2147483647, %v143_v19  ;;  %v236_v2 = vand.u32 2147483647, %v218_v49  ;;  %v311_v5 = vsel %vm459_vm1, %v443_v9, %v308_v52 }
 0x115   :  { %v235_v39 = vand.u32 2147483647, %v217_v53  ;;  %v241_v3 = vand.u32 2147483647, %v231_v54  ;;  %v242_v4 = vand.u32 2147483647, %v232_v55  ;;  %v313_v21 = vsub.f32 %v311_v5, %v305_v12 }
 0x116   :  { %v322_v10 = vrot.slane %v314_v35, 7  ;;  %v328_v11 = vrot.slane %v314_v35, 1  ;;  %v319_v20 = vadd.f32 %v317_v60, %v311_v5  ;;  %v240_v58 = vand.u32 2147483647, %v144_v22 }
 0x117   :  { %v334_v14 = vmul.f32 2.0, %v314_v35  ;;  %v340_v18 = vrot.slane %v320_v59, 7  ;;  %v346_v28 = vrot.slane %v320_v59, 1  ;;  %vm703_vm6 = vcmp.gt.f32.partialorder %v234_v1, %v236_v2 }
 0x118   :  { %v321_v13 = vrot.slane %v313_v21, 7  ;;  %v327_v19 = vrot.slane %v313_v21, 1  ;;  %v339_v17 = vrot.slane %v319_v20, 7  ;;  %vm707_vm7 = vcmp.gt.f32.partialorder %v233_v61, %v235_v39 }
 0x119   :  { %vm243_vm8 = vcmp.gt.f32.partialorder %v239_v63, %v241_v3  ;;  %vm244_vm9 = vcmp.gt.f32.partialorder %v240_v58, %v242_v4  ;;  %v345_v9 = vrot.slane %v319_v20, 1  ;;  %v333_v1 = vmul.f32 2.0, %v313_v21 }
 0x11a   :  { %v323_v23 = vsel %vm75_vm3, %v321_v13, %v322_v10  ;;  %v324_v12 = vsel %vm75_vm3, %v322_v10, %v321_v13  ;;  %v330_v22 = vsel %vm82_vm4, %v328_v11, %v327_v19  ;;  %v341_v15 = vsel %vm75_vm3, %v339_v17, %v340_v18 }
 0x11b   :  { %v325_v30 = vsel %vm37_vm2, %v313_v21, %v324_v12  ;;  %v332_v31 = vsel %vm44_vm5, %v314_v35, %v330_v22  ;;  %v336_v32 = vadd.f32 %v334_v14, %v323_v23  ;;  %v342_v33 = vsel %vm75_vm3, %v340_v18, %v339_v17 }
 0x11c   :  { %v335_v36 = vadd.f32 %v333_v1, %v325_v30  ;;  %v347_v34 = vsel %vm82_vm4, %v345_v9, %v346_v28  ;;  %v348_v37 = vsel %vm82_vm4, %v346_v28, %v345_v9  ;;  %v329_v8 = vsel %vm82_vm4, %v327_v19, %v328_v11 }
 0x11d   :  { %v338_v40 = vadd.f32 %v336_v32, %v332_v31  ;;  %v343_v35 = vsel %vm37_vm2, %v319_v20, %v342_v33  ;;  %v350_v41 = vsel %vm44_vm5, %v320_v59, %v348_v37  ;;  %v298_v42 = vsub.f32 %v643_v56, %v603_v25 }
 0x11e   :  { %v337_v43 = vadd.f32 %v335_v36, %v329_v8  ;;  %v351_v6 = vsub.f32 %v347_v34, %v343_v35  ;;  %v352_v62 = vsub.f32 %v350_v41, %v341_v15 }
 0x11f   :  { %v354_v7 = vsel %vm703_vm6, %v599_v24, %v338_v40 }
 0x120   :  { %v353_v45 = vsel %vm707_vm7, %v618_v38, %v337_v43  ;;  %v355_v16 = vsel %vm243_vm8, %v297_v57, %v351_v6  ;;  %v356_v26 = vsel %vm244_vm9, %v298_v42, %v352_v62  ;;  %v358_v46 = vmul.f32 %v354_v7, %v354_v7 }
 0x121   :  { %v357_v25 = vmul.f32 %v353_v45, %v353_v45  ;;  %v359_v56 = vmul.f32 %v355_v16, %v355_v16  ;;  %v360_v47 = vmul.f32 %v356_v26, %v356_v26 }
 0x123   :  { %v361_v48 = vadd.f32 %v359_v56, %v357_v25  ;;  %v362_v49 = vadd.f32 %v360_v47, %v358_v46 }
 0x125   :  { %v363_v50 = vadd.f32 %v362_v49, %v361_v48 }
 0x127   :  { %364 = vst [vmem:[%s754_s3] sm:$0xff] %v363_v50 }

</bundles_post_ra>
